<compile_context>
chip_gen: v7x
topology: tpu7x:2x2x1
jax: 0.10.0
libtpu: 0.0.40
codegen_flags: <defaults>
</compile_context>

<pallas_src>
import jax
import jax.numpy as jnp
from jax import lax
from jax.experimental import pallas as pl
from jax.experimental.pallas import tpu as pltpu


def _make_kernel(fm_resident, mxu_dtype):
    def smg_kernel(x_ref, fm_ref, out_ref, ss_ref):
        """Grid = (batch_tiles, hw_tiles).

        x_ref:   (Bt, C, tk)      flattened-NCHW feature slice (native dtype)
        fm_ref:  (1, C, HW_pad)   resident EMA map (or (1, C, tk) tiled slice)
        out_ref: (Bt, C, C)       Gram accumulator / final cosine similarity (f32)
        ss_ref:  (Bt, C, 1)       per-channel sum-of-squares accumulator (f32)
        """
        k = pl.program_id(1)
        tk = x_ref.shape[2]

        if fm_resident and tk < fm_ref.shape[2]:
            start = pl.multiple_of(k * tk, 128)
            fm = fm_ref[:, :, pl.ds(start, tk)]            # (1, C, tk) slice of resident map
        else:
            fm = fm_ref[...]                               # (1, C, tk) (or full map, single k)

        # "Local" = x - EMA mean, computed in f32 (parity with the torch f32 math).
        local = x_ref[...].astype(jnp.float32) - fm.astype(jnp.float32)

        # Batched contraction over the HW (last) dim of both operands -> (Bt, C, C);
        # expressed directly so no explicit transpose goes through the XLU.
        lhs = local.astype(mxu_dtype)
        g = lax.dot_general(
            lhs, lhs,
            dimension_numbers=(((2,), (2,)), ((0,), (0,))),
            preferred_element_type=jnp.float32)
        ss = jnp.sum(local * local, axis=-1, keepdims=True)   # (Bt, C, 1), f32

        @pl.when(k == 0)
        def _():              # first HW tile: plain store (no zero-fill, no RMW)
            out_ref[...] = g
            ss_ref[...] = ss

        @pl.when(k > 0)
        def _():              # remaining HW tiles: accumulate into the resident block
            out_ref[...] += g
            ss_ref[...] += ss

        @pl.when(k == pl.num_programs(1) - 1)
        def _():
            ssv = ss_ref[...]                                  # (Bt, C, 1)
            # max(sqrt(p), 1e-8) == sqrt(max(p, 1e-16)); rsqrt lands on the EUP slot.
            denom = jnp.maximum(ssv * jnp.swapaxes(ssv, 1, 2), jnp.float32(1e-16))
            out_ref[...] = out_ref[...] * lax.rsqrt(denom)

    return smg_kernel


def _device_budgets():
    """(tile-search working-set budget, vmem_limit_bytes) for the local chip."""
    try:
        vmem_cap = pltpu.get_tpu_info().vmem_capacity_bytes
    except Exception:
        vmem_cap = 64 * 1024 * 1024          # unknown -> assume v7x-sized VMEM
    if vmem_cap >= 100 * 1024 * 1024:        # v5e / v6e: 128 MiB physical VMEM
        return 56 * 1024 * 1024, 100 * 1024 * 1024
    return 22 * 1024 * 1024, 48 * 1024 * 1024   # v7x: 64 MiB physical VMEM


def _choose_tiles(B, C, HW_pad, x_itemsize, fm_resident, budget_bytes):
    """Pick (Bt, tk): maximize the HW tile first (fewer reduction steps and fewer
    accumulator RMWs), then the batch tile, subject to the per-chip VMEM budget
    and to keeping >= 2 steps on the parallel batch axis (v7x megacore)."""
    def footprint(bt, tk):
        x_bytes = 2 * bt * C * tk * x_itemsize                  # input, double-buffered
        fm_bytes = 2 * C * (HW_pad if fm_resident else tk) * 4  # EMA map
        out_bytes = 2 * bt * C * C * 4                          # resident output/accumulator
        ss_bytes = bt * C * 128 * 4                             # (Bt, C, 1) scratch, lane-padded
        return x_bytes + fm_bytes + out_bytes + ss_bytes

    tk_candidates = sorted(
        (t for t in range(128, HW_pad + 1, 128) if HW_pad % t == 0), reverse=True)
    bt_max = B // 2 if B >= 2 else 1          # >= 2 parallel grid steps when possible
    bt_candidates = [b for b in range(bt_max, 0, -1) if B % b == 0]
    for tk in tk_candidates:
        for bt in bt_candidates:
            if footprint(bt, tk) <= budget_bytes:
                return bt, tk
    return 1, 128        # best effort at extreme C*HW (vmem_limit still governs)


def smg_block_forward(x, ema_fm=None, decay=0.95, first_decay=0.0):
    """JAX/Pallas equivalent of SMGBlock.forward.

    Returns (similarity, new_ema_fm).  The EMA shadow ("FM", shape (HW, C)) is
    carried functionally; the first call (ema_fm=None) uses first_decay=0.0,
    matching EMA_FM._register / update semantics.
    """
    B, C, H, W = x.shape
    HW = H * W
    x_flat = x.reshape(B, C, HW)                  # native dtype, no f32 copy in HBM

    # --- EMA_FM.update (stateful + no_grad in the original; wrapper glue) ---
    # TODO(synk): the EMA shadow is module state in torch; carried functionally here.
    d = first_decay if ema_fm is None else decay
    prev = jnp.zeros((HW, C), jnp.float32) if ema_fm is None else ema_fm
    # mean(theta_x, 0) == mean(x_flat, 0).T : reduce first, transpose the small
    # (C, HW) mean instead of materializing theta_x = (B, HW, C) in HBM.
    mean_chw = jnp.mean(x_flat, axis=0, dtype=jnp.float32)        # (C, HW)
    f_mean = (1.0 - d) * mean_chw.T + d * prev                    # (HW, C) EMA shadow
    # torch: f_mean.view(1, C, HW) -> raw row-major reshape, NOT a transpose.
    f_mean_r = f_mean.reshape(1, C, HW)

    # Lane-align HW: padded zeros give local = 0 - 0 = 0, contributing nothing
    # to the Gram matrix or to the per-channel norms.
    HW_pad = ((HW + 127) // 128) * 128
    if HW_pad != HW:
        pad = HW_pad - HW
        x_flat = jnp.pad(x_flat, ((0, 0), (0, 0), (0, pad)))
        f_mean_r = jnp.pad(f_mean_r, ((0, 0), (0, 0), (0, pad)))

    budget, vmem_limit = _device_budgets()
    fm_resident = 2 * C * HW_pad * 4 <= budget // 3
    Bt, tk = _choose_tiles(B, C, HW_pad, jnp.dtype(x_flat.dtype).itemsize,
                           fm_resident, budget)

    # f32 MXU operands for f32 inputs (torch parity); bf16/f16 inputs use the
    # native bf16 MXU path (f32 accumulation), matching what torch would do.
    if jnp.dtype(x.dtype) in (jnp.dtype(jnp.bfloat16), jnp.dtype(jnp.float16)):
        mxu_dtype = jnp.bfloat16
    else:
        mxu_dtype = jnp.float32

    if fm_resident:
        fm_spec = pl.BlockSpec((1, C, HW_pad), lambda b, k: (0, 0, 0))  # DMA'd once
    else:
        fm_spec = pl.BlockSpec((1, C, tk), lambda b, k: (0, 0, k))      # streamed tiles

    sim = pl.pallas_call(
        _make_kernel(fm_resident, mxu_dtype),
        out_shape=jax.ShapeDtypeStruct((B, C, C), jnp.float32),
        grid_spec=pltpu.PrefetchScalarGridSpec(
            num_scalar_prefetch=0,
            grid=(B // Bt, HW_pad // tk),
            in_specs=[
                pl.BlockSpec((Bt, C, tk), lambda b, k: (b, 0, k)),   # features
                fm_spec,                                             # EMA map
            ],
            out_specs=pl.BlockSpec((Bt, C, C), lambda b, k: (b, 0, 0)),
            scratch_shapes=[pltpu.VMEM((Bt, C, 1), jnp.float32)],
        ),
        compiler_params=pltpu.CompilerParams(
            # batch axis shards across v7x's two TensorCores; HW axis is a reduction
            dimension_semantics=("parallel", "arbitrary"),
            vmem_limit_bytes=vmem_limit,
        ),
    )(x_flat, f_mean_r)
    return sim, f_mean


def _reference(x):
    """Pure-JAX transcription of the torch forward (first call) for checking."""
    B, C, H, W = x.shape
    HW = H * W
    xf = x.reshape(B, C, HW).astype(jnp.float32)
    theta = jnp.transpose(xf, (0, 2, 1))
    f_mean = jnp.mean(theta, axis=0).reshape(1, C, HW)
    local = xf - f_mean
    w1 = jnp.sqrt(jnp.sum(local * local, axis=-1, keepdims=True))
    num = jnp.einsum("bch,bdh->bcd", local, local)
    den = jnp.maximum(w1 * jnp.transpose(w1, (0, 2, 1)), 1e-8)
    return num / den


if __name__ == "__main__":
    key = jax.random.PRNGKey(0)
    B, C, H, W = 2, 32, 8, 8          # channel_size=32, f_map_size=H*W=64
    x = jax.random.normal(key, (B, C, H, W), dtype=jnp.float32)

    sim, ema_state = smg_block_forward(x)   # first call: EMA shadow starts at zeros
    sim = jax.block_until_ready(sim)

    ref = _reference(x)
    assert sim.shape == (B, C, C)
    assert jnp.allclose(sim, ref, atol=1e-4, rtol=1e-4), "mismatch vs reference"

    print("KERNEL_OK")
</pallas_src>

<mosaic_0001>
module attributes {stable_mosaic.version = 11 : i64} {
  func.func @smg_kernel(%arg0: i32, %arg1: i32, %arg2: memref<1x32x128xf32, #tpu.memory_space<vmem>>, %arg3: memref<1x32x128xf32, #tpu.memory_space<vmem>>, %arg4: memref<1x32x32xf32, #tpu.memory_space<vmem>>, %arg5: memref<1x32x1xf32, #tpu.memory_space<vmem>>) attributes {dimension_semantics = [#tpu.dimension_semantics<parallel>, #tpu.dimension_semantics<arbitrary>], iteration_bounds = array<i64: 2, 1>, scalar_prefetch = 0 : i64, scratch_operands = 1 : i64, tpu.core_type = #tpu.core_type<tc>, window_params = [{transform_indices = @transform_0, window_bounds = array<i64: 1, 32, 128>}, {pipeline_mode = #tpu.pipeline_mode<synchronous>, transform_indices = @transform_1, window_bounds = array<i64: 1, 32, 128>}, {transform_indices = @transform_2, window_bounds = array<i64: 1, 32, 32>}]} {
    %c0 = arith.constant 0 : index
    %c0_0 = arith.constant 0 : index
    %c0_1 = arith.constant 0 : index
    %0 = vector.load %arg3[%c0, %c0_0, %c0_1] : memref<1x32x128xf32, #tpu.memory_space<vmem>>, vector<1x32x128xf32>
    %c0_2 = arith.constant 0 : index
    %c0_3 = arith.constant 0 : index
    %c0_4 = arith.constant 0 : index
    %1 = vector.load %arg2[%c0_2, %c0_3, %c0_4] : memref<1x32x128xf32, #tpu.memory_space<vmem>>, vector<1x32x128xf32>
    %2 = arith.subf %1, %0 : vector<1x32x128xf32>
    %cst = arith.constant dense<0.000000e+00> : vector<1x32x32xf32>
    %3 = tpu.matmul %2, %2, %cst {dimension_numbers = #tpu.dot_dimension_numbers<[2], [2], [1], [1], [0, 0, 0, 1, 1, 1], [0], [0]>} : vector<1x32x128xf32>, vector<1x32x128xf32>, vector<1x32x32xf32> -> vector<1x32x32xf32>
    %4 = arith.mulf %2, %2 : vector<1x32x128xf32>
    %cst_5 = arith.constant dense<0.000000e+00> : vector<1x32xf32>
    %5 = vector.multi_reduction <add>, %4, %cst_5 [2] : vector<1x32x128xf32> to vector<1x32xf32>
    %6 = vector.shape_cast %5 : vector<1x32xf32> to vector<1x32x1xf32>
    %c0_i32 = arith.constant 0 : i32
    %7 = arith.cmpi eq, %arg1, %c0_i32 : i32
    %8 = arith.extui %7 : i1 to i32
    %c0_i32_6 = arith.constant 0 : i32
    %9 = arith.cmpi ne, %8, %c0_i32_6 : i32
    scf.if %9 {
      %c0_11 = arith.constant 0 : index
      %c0_12 = arith.constant 0 : index
      %c0_13 = arith.constant 0 : index
      %16 = vector.load %arg4[%c0_11, %c0_12, %c0_13] : memref<1x32x32xf32, #tpu.memory_space<vmem>>, vector<1x32x32xf32>
      tpu.vector_store %arg4[%c0_11, %c0_12, %c0_13], %3 {strides = array<i32>} : memref<1x32x32xf32, #tpu.memory_space<vmem>>, vector<1x32x32xf32>,
      %c0_14 = arith.constant 0 : index
      %c0_15 = arith.constant 0 : index
      %c0_16 = arith.constant 0 : index
      %17 = vector.load %arg5[%c0_14, %c0_15, %c0_16] : memref<1x32x1xf32, #tpu.memory_space<vmem>>, vector<1x32x1xf32>
      tpu.vector_store %arg5[%c0_14, %c0_15, %c0_16], %6 {strides = array<i32>} : memref<1x32x1xf32, #tpu.memory_space<vmem>>, vector<1x32x1xf32>,
    } else {
    }
    %c0_i32_7 = arith.constant 0 : i32
    %10 = arith.cmpi sgt, %arg1, %c0_i32_7 : i32
    %11 = arith.extui %10 : i1 to i32
    %c0_i32_8 = arith.constant 0 : i32
    %12 = arith.cmpi ne, %11, %c0_i32_8 : i32
    scf.if %12 {
      %c0_11 = arith.constant 0 : index
      %c0_12 = arith.constant 0 : index
      %c0_13 = arith.constant 0 : index
      %16 = vector.load %arg4[%c0_11, %c0_12, %c0_13] : memref<1x32x32xf32, #tpu.memory_space<vmem>>, vector<1x32x32xf32>
      %17 = arith.addf %16, %3 : vector<1x32x32xf32>
      %c0_14 = arith.constant 0 : index
      %c0_15 = arith.constant 0 : index
      %c0_16 = arith.constant 0 : index
      %18 = vector.load %arg4[%c0_14, %c0_15, %c0_16] : memref<1x32x32xf32, #tpu.memory_space<vmem>>, vector<1x32x32xf32>
      tpu.vector_store %arg4[%c0_14, %c0_15, %c0_16], %17 {strides = array<i32>} : memref<1x32x32xf32, #tpu.memory_space<vmem>>, vector<1x32x32xf32>,
      %c0_17 = arith.constant 0 : index
      %c0_18 = arith.constant 0 : index
      %c0_19 = arith.constant 0 : index
      %19 = vector.load %arg5[%c0_17, %c0_18, %c0_19] : memref<1x32x1xf32, #tpu.memory_space<vmem>>, vector<1x32x1xf32>
      %20 = arith.addf %19, %6 : vector<1x32x1xf32>
      %c0_20 = arith.constant 0 : index
      %c0_21 = arith.constant 0 : index
      %c0_22 = arith.constant 0 : index
      %21 = vector.load %arg5[%c0_20, %c0_21, %c0_22] : memref<1x32x1xf32, #tpu.memory_space<vmem>>, vector<1x32x1xf32>
      tpu.vector_store %arg5[%c0_20, %c0_21, %c0_22], %20 {strides = array<i32>} : memref<1x32x1xf32, #tpu.memory_space<vmem>>, vector<1x32x1xf32>,
    } else {
    }
    %c0_i32_9 = arith.constant 0 : i32
    %13 = arith.cmpi eq, %arg1, %c0_i32_9 : i32
    %14 = arith.extui %13 : i1 to i32
    %c0_i32_10 = arith.constant 0 : i32
    %15 = arith.cmpi ne, %14, %c0_i32_10 : i32
    scf.if %15 {
      %c0_11 = arith.constant 0 : index
      %c0_12 = arith.constant 0 : index
      %c0_13 = arith.constant 0 : index
      %16 = vector.load %arg5[%c0_11, %c0_12, %c0_13] : memref<1x32x1xf32, #tpu.memory_space<vmem>>, vector<1x32x1xf32>
      %17 = tpu.transpose %16, [0, 2, 1] : vector<1x32x1xf32> -> vector<1x1x32xf32>
      %18 = vector.broadcast %16 : vector<1x32x1xf32> to vector<1x32x32xf32>
      %19 = vector.broadcast %17 : vector<1x1x32xf32> to vector<1x32x32xf32>
      %20 = arith.mulf %18, %19 : vector<1x32x32xf32>
      %cst_14 = arith.constant 1.000000e-16 : f32
      %21 = vector.broadcast %cst_14 : f32 to vector<1x32x32xf32>
      %22 = arith.maximumf %20, %21 : vector<1x32x32xf32>
      %c0_15 = arith.constant 0 : index
      %c0_16 = arith.constant 0 : index
      %c0_17 = arith.constant 0 : index
      %23 = vector.load %arg4[%c0_15, %c0_16, %c0_17] : memref<1x32x32xf32, #tpu.memory_space<vmem>>, vector<1x32x32xf32>
      %24 = math.rsqrt %22 : vector<1x32x32xf32>
      %25 = arith.mulf %23, %24 : vector<1x32x32xf32>
      %c0_18 = arith.constant 0 : index
      %c0_19 = arith.constant 0 : index
      %c0_20 = arith.constant 0 : index
      %26 = vector.load %arg4[%c0_18, %c0_19, %c0_20] : memref<1x32x32xf32, #tpu.memory_space<vmem>>, vector<1x32x32xf32>
      tpu.vector_store %arg4[%c0_18, %c0_19, %c0_20], %25 {strides = array<i32>} : memref<1x32x32xf32, #tpu.memory_space<vmem>>, vector<1x32x32xf32>,
    } else {
    }
    return
  }
  func.func @transform_0(%arg0: i32, %arg1: i32) -> (i32, i32, i32) {
    %c0_i32 = arith.constant 0 : i32
    %c0_i32_0 = arith.constant 0 : i32
    return %arg0, %c0_i32, %arg1 : i32, i32, i32
  }
  func.func @transform_1(%arg0: i32, %arg1: i32) -> (i32, i32, i32) {
    %c0_i32 = arith.constant 0 : i32
    %c0_i32_0 = arith.constant 0 : i32
    %c0_i32_1 = arith.constant 0 : i32
    %c0_i32_2 = arith.constant 0 : i32
    return %c0_i32, %c0_i32_0, %c0_i32_1 : i32, i32, i32
  }
  func.func @transform_2(%arg0: i32, %arg1: i32) -> (i32, i32, i32) {
    %c0_i32 = arith.constant 0 : i32
    %c0_i32_0 = arith.constant 0 : i32
    %c0_i32_1 = arith.constant 0 : i32
    return %arg0, %c0_i32, %c0_i32_0 : i32, i32, i32
  }
}

</mosaic_0001>

<bundles_post_ra>
// kernel: tpu_custom_call.1
= control target key start
LH: loop header
LB: loop body
LE: loop exit
PB: predicated region body
PF: predicated region fallthrough
CT: control target
= control target key end

     0   :  { %7 = vsyncpa [#allocation4], 0  ;;  %s1103_s0 = inlined_call_operand.hbm [shape: f32[2,32,128], index: 0, kind: input, shape index: {}]   ;;  %s1104_s1 = inlined_call_operand.hbm [shape: f32[1,32,128], index: 1, kind: input, shape index: {}]   ;;  %s1105_s2 = inlined_call_operand.hbm [shape: f32[2,32,32], index: 2, kind: output, shape index: {}]  }
   0x1   :  { %9 = vsyncpa [#allocation4 + $0x1], 0 }
   0x2   :  { %10 = vsyncpa [#allocation7], 0 }
   0x3   :  { %11 = vsyncpa [#allocation5], 0 }
   0x4   :  { %13 = vsyncpa [#allocation5 + $0x1], 0  ;;  %s851_s9 = smov 0   ;;  %s853_s10 = smov 0  }
   0x5   :  { %s855_s11 = smov 0   ;;  %s857_s12 = smov 0  }
   0x6   :  { %s859_s13 = smov 0   ;;  %s861_s14 = smov 0  }
   0x7 LB: > { %s540_s15 = sadd.s32 4294967295, %s826_s14   ;;  %s541_s16 = sadd.s32 4294967294, %s826_s14   ;;  %s826_s14 = sphi %s861_s14, %s19_s14   ;;  %s822_s13 = sphi %s859_s13, %s1129_s13   ;;  %s818_s12 = sphi %s857_s12, %s1128_s12   ;;  %s814_s11 = sphi %s855_s11, %s1127_s11   ;;  %s810_s10 = sphi %s853_s10, %s1126_s10   ;;  %s806_s9 = sphi %s851_s9, %s1125_s9  }
   0x8   : > { %p53_p0 = scmp.ne.s32.totalorder %s810_s10, %s806_s9  ;;  %p885_p1 = scmp.eq.s32.totalorder %s540_s15, 0 }
   0x9   : > { %p889_p2 = scmp.eq.s32.totalorder %s540_s15, 1  ;;  %p104_p3 = scmp.eq.s32.totalorder %s541_s16, 1 }
   0xa   : > { %s1110_s17 = scalar_select %p885_p1, 1, 0 }
   0xb   : > { %s1111_s18 = scalar_select %p889_p2, 1, 0 }
   0xc   : > { %p895_p4 = por %p885_p1, %p53_p0  ;;  %p542_p5 = scmp.ge.s32.totalorder %s826_s14, 1 }
   0xd   : > { %p900_p6 = por %p104_p3, %p53_p0  ;;  %p111_p7 = scmp.lt.s32.totalorder %s826_s14, 3 }
   0xe   : > { %s1112_s19 = scalar_select %p895_p4, 1, 0 }
   0xf   : > { %s1113_s20 = scalar_select %p900_p6, 1, 0 }
  0x10   : > { %p905_p8 = pnand %p542_p5, %p111_p7  ;;  %s828_s22 = smov [#allocation6]  }
  0x11   : > { %s123_s23 = sshll.u32 %s828_s22, 4  ;;  %s31_s25 = sadd.s32 1, %s822_s13  ;;  %s124_s23 = int_to_ptr.vmem [resolvable:$true] %s123_s23 }
  0x12   : > { %s1114_s21 = scalar_select %p905_p8, 1, 0 }
  0x13   : > { %p601_p9 = pneg %p905_p8  ;;  %s682_s28 = scalar_lea.hbm %s1104_s1, 512 }
  0x14   : > { %p683_p12 = scmp.ne.s32.totalorder %s1104_s1, %s682_s28  ;;  %p689_p5 = scmp.lt.u32.totalorder %s682_s28, %s1104_s1 }
  0x15   : > { %p914_p11 = pnand %p601_p9, %p885_p1 }
  0x17   : > { %p684_p13 = pneg %p914_p11 }
  0x19   : > { %p685_p0 = pnand %p684_p13, %p683_p12 }
  0x1b   : > { %p686_p3 = pneg %p685_p0 }
  0x1d   : > { %p691_p7 = pnand %p689_p5, %p686_p3 }
  0x1f   : > { %694 = shalt.err (!%p691_p7)
}
  0x20   : > { %s695_s5 = scalar_lea.vmem %s124_s23, 512  ;;  %p703_p1 = scmp.lt.s32.totalorder %s124_s23, %s124_s23 }
  0x21   : > { %p696_p9 = scmp.ne.s32.totalorder %s124_s23, %s695_s5  ;;  %p704_p4 = scmp.lt.s32.totalorder %s695_s5, %s695_s5 }
  0x23   : > { %p698_p10 = pnand %p696_p9, %p684_p13  ;;  %p705_p8 = por %p704_p4, %p703_p1 }
  0x25   : > { %p699_p6 = pneg %p698_p10 }
  0x27   : > { %p706_p2 = pnand %p705_p8, %p699_p6 }
  0x29   : > { %709 = shalt.err (!%p706_p2)
}
  0x2a   : > { %s829_s6 = smov 128   ;;  %s830_s7 = smov 8  }
  0x2b   : > { %604 = dma.hbm_to_vmem [thread:$0]  (!%p914_p11), %s1104_s1, 512, %s124_s23, [#allocation7], %s829_s6, %s829_s6, %s830_s7  }
  0x2c   : > { %p33_p1 = scmp.ge.s32.totalorder %s31_s25, 2  ;;  %s40_s16 = sadd.s32 1, %s814_s11 }
  0x2d   : > { %p47_p2 = scmp.ne.s32.totalorder %s814_s11, %s810_s10  ;;  %p48_p4 = scmp.eq.s32.totalorder %s826_s14, 0 }
  0x2e   : > { %s1131_s25 = smov (%p33_p1, %s31_s25), 0  ;;  %p1117_p8 = scmp.ne.s32.totalorder %s1111_s18, 0 }
  0x2f   : > { %p944_p6 = por %p48_p4, %p47_p2  ;;  %s35_s26 = ssub.s32 %s822_s13, %s1131_s25 }
  0x30   : > { %p950_p10 = por %p1117_p8, %p47_p2  ;;  %p614_p12 = scmp.lt.s32.totalorder %s826_s14, 2 }
  0x31   : > { %p38_p11 = scmp.eq.s32.totalorder %s35_s26, 0  ;;  %s137_s23 = sand.u32 1, %s814_s11  }
  0x32   : > { %s545_s27 = sshll.u32 %s137_s23, 5  ;;  %s557_s29 = sshll.u32 %s822_s13, 9 }
  0x33   : > { %s959_s28 = scalar_select %p38_p11, %s814_s11, %s40_s16  }
  0x34   : > { %s965_s4 = scalar_lea.hbm %s1103_s0, %s557_s29  ;;  %s141_s18 = scalar_lea.vmem [#allocation3], %s545_s27 }
  0x35   : > { %s149_s5 = sshll.u32 %s141_s18, 4  ;;  %p971_p13 = pnand %p614_p12, %p944_p6  ;;  %s967_s5 = int_to_ptr.vmem [resolvable:$true] %s149_s5 }
  0x36   : > { %s975_s15 = scalar_lea.sflag [#allocation4], %s137_s23  ;;  %s710_s16 = scalar_lea.hbm %s965_s4, 512 }
  0x37   : > { %p711_p0 = scmp.ne.s32.totalorder %s965_s4, %s710_s16  ;;  %p712_p3 = pneg %p971_p13 }
  0x38   : > { %s715_s22 = scalar_lea.hbm %s1103_s0, 1024  ;;  %p716_p9 = scmp.lt.u32.totalorder %s965_s4, %s1103_s0 }
  0x39   : > { %p713_p5 = pnand %p712_p3, %p711_p0  ;;  %p717_p1 = scmp.lt.u32.totalorder %s715_s22, %s710_s16 }
  0x3a   : > { %p719_p4 = scmp.lt.u32.totalorder %s710_s16, %s965_s4 }
  0x3b   : > { %p714_p7 = pneg %p713_p5  ;;  %p718_p2 = por %p717_p1, %p716_p9 }
  0x3d   : > { %p720_p6 = por %p719_p4, %p718_p2 }
  0x3f   : > { %p721_p8 = pnand %p720_p6, %p714_p7 }
  0x41   : > { %724 = shalt.err (!%p721_p8)
}
  0x42   : > { %s725_s23 = scalar_lea.vmem %s967_s5, 512  ;;  %s831_s3 = smov [#allocation3]  }
  0x43   : > { %p726_p12 = scmp.ne.s32.totalorder %s967_s5, %s725_s23  ;;  %s730_s18 = sshll.u32 %s831_s3, 4  ;;  %s731_s18 = int_to_ptr.vmem [resolvable:$false] %s730_s18 }
  0x44   : > { %s732_s26 = scalar_lea.vmem %s731_s18, 1024  ;;  %p733_p5 = scmp.lt.s32.totalorder %s967_s5, %s731_s18 }
  0x45   : > { %p728_p11 = pnand %p726_p12, %p712_p3  ;;  %p734_p9 = scmp.lt.s32.totalorder %s732_s26, %s725_s23 }
  0x47   : > { %p729_p0 = pneg %p728_p11  ;;  %p735_p1 = por %p734_p9, %p733_p5 }
  0x49   : > { %p736_p2 = pnand %p735_p1, %p729_p0 }
  0x4b   : > { %739 = shalt.err (!%p736_p2)
}
  0x4c   : > { %608 = dma.hbm_to_vmem [thread:$0]  (!%p971_p13), %s965_s4, 512, %s967_s5, %s975_s15, %s829_s6, %s829_s6, %s830_s7  }
  0x4d   : > { %p1120_p3 = scmp.ne.s32.totalorder %s1114_s21, 0 }
  0x4e   : > { %s1009_s16 = sand.u32 (!%p1120_p3), 1, %s810_s10   ;;  %p1121_p7 = scmp.ne.s32.totalorder (!%p1120_p3), %s1112_s19, 0 }
  0x4f   : > { %161 = sbr.rel (%p1120_p3) target bundleno = 465 (0x1d1), region = 28  ;;  %s549_s27 = sshll.u32 (!%p1120_p3), %s1009_s16, 5 }
  0x50   : > { %s164_s22 = scalar_lea.sflag (!%p1120_p3), [#allocation4], %s1009_s16  ;;  %s167_s8 = scalar_lea.vmem (!%p1120_p3), [#allocation3], %s549_s27 }
  0x56   : > { %793 = dma.done.wait (%p1121_p7), %s164_s22, 512  }
  0x57   : > { %795 = vsyncadd (%p1121_p7), %s164_s22, 4294966784  ;;  %p1122_p13 = scmp.ne.s32.totalorder %s1110_s17, 0 }
  0x59   : > { %797 = dma.done.wait (%p1122_p13), [#allocation7], 512  }
  0x5a   : > { %799 = vsyncadd (%p1122_p13), [#allocation7], 4294966784  ;;  %v192_v0 = vld [vmem:[#allocation6] sm:$0xff]  ;;  %v193_v2 = vld [vmem:[#allocation6 + $0x8] sm:$0xff]  ;;  %v832_v18 = vmov 0   ;;  %vm310_vm0 = vcmask 7168   ;;  %v404_v32 = vlaneseq }
  0x5b   : > { %v196_v1 = vld [vmem:[%s167_s8] sm:$0xff]  ;;  %v197_v4 = vld [vmem:[%s167_s8 + $0x8] sm:$0xff]  ;;  %v194_v5 = vld [vmem:[#allocation6 + $0x10] sm:$0xff]  ;;  %672 = vset.pattern.permute.xlu0 %v832_v18  ;;  %673 = vset.pattern.permute.xlu1 %v832_v18  ;;  %vm305_vm1 = vcmask 261120   ;;  %s1025_s17 = scalar_lea.vmem [#allocation8], %s549_s27  ;;  %s558_s19 = sshll.u32 %s818_s12, 9 }
  0x5c   : > { %v200_v3 = vsub.f32 %v196_v1, %v192_v0  ;;  %v198_v6 = vld [vmem:[%s167_s8 + $0x10] sm:$0xff]  ;;  %v201_v7 = vsub.f32 %v197_v4, %v193_v2  ;;  %v195_v9 = vld [vmem:[#allocation6 + $0x18] sm:$0xff]  ;;  %v405_v34 = vshrl.u32 %v404_v32, 7  ;;  %s447_s21 = sshll.u32 %s1025_s17, 4  ;;  %s1046_s4 = scalar_lea.hbm %s1105_s2, %s558_s19  ;;  %s1048_s21 = int_to_ptr.vmem [resolvable:$true] %s447_s21 }
  0x5d   : > { %v202_v8 = vsub.f32 %v198_v6, %v194_v5  ;;  %v199_v10 = vld [vmem:[%s167_s8 + $0x18] sm:$0xff]  ;;  %s434_s12 = scalar_lea.sflag [#allocation5], %s1009_s16  ;;  %s740_s5 = scalar_lea.vmem %s1048_s21, 512 }
  0x5e   : > { %v289_v11 = vmul.f32 %v200_v3, %v200_v3  ;;  %v203_v12 = vsub.f32 %v199_v10, %v195_v9  ;;  %575 = vmatprep.mubr.f32.mxu0 %v200_v3  ;;  %v581_v14 = vpack.c.bf16 %v201_v7, %v200_v3  ;;  %v290_v15 = vmul.f32 %v201_v7, %v201_v7  ;;  %p741_p4 = scmp.ne.s32.totalorder %s1048_s21, %s740_s5  ;;  %s833_s15 = smov [#allocation8]  }
  0x5f   : > { %v291_v13 = vmul.f32 %v202_v8, %v202_v8  ;;  %578 = vmatprep.mubr.f32.mxu1 %v202_v8  ;;  %v406_v36 = vsub.s32 0, %v405_v34  ;;  %s744_s29 = sshll.u32 %s833_s15, 4  ;;  %s745_s29 = int_to_ptr.vmem [resolvable:$false] %s744_s29 }
  0x60   : > { %293 = vadd.xlane.f32.xlu0 %v289_v11  ;;  %v585_v16 = vpack.c.bf16 %v203_v12, %v202_v8  ;;  %v292_v17 = vmul.f32 %v203_v12, %v203_v12  ;;  %582 = vmatprep.subr.bf16.mxu0 %v581_v14  ;;  %p742_p6 = pnand %p741_p4, %p950_p10  ;;  %s746_s30 = scalar_lea.vmem %s745_s29, 1024 }
  0x61   : > { %297 = vadd.xlane.f32.xlu1 %v291_v13  ;;  %589 = vmatprep.subr.bf16.mxu1 %v581_v14  ;;  %p747_p12 = scmp.lt.s32.totalorder %s1048_s21, %s745_s29  ;;  %p748_p11 = scmp.lt.s32.totalorder %s746_s30, %s740_s5 }
  0x62   : > { %584 = vmatpush3.bf16.xpose.msra.mxu0 %v581_v14  ;;  %591 = vmatpush3.bf16.xpose.msra.mxu1 %v581_v14  ;;  %p743_p8 = pneg %p742_p6 }
  0x63   : > { %586 = vmatprep.subr.bf16.mxu0 %v585_v16  ;;  %590 = vmatprep.subr.bf16.mxu1 %v585_v16  ;;  %p749_p0 = por %p748_p11, %p747_p12 }
  0x64   : > { %295 = vadd.xlane.f32.xlu0 %v290_v15 }
  0x65   : > { %299 = vadd.xlane.f32.xlu1 %v292_v17  ;;  %p750_p5 = pnand %p749_p0, %p743_p8 }
  0x6a   : > { %588 = vmatpush3.bf16.xpose.msra.mxu0 %v585_v16  ;;  %592 = vmatpush3.bf16.xpose.msra.mxu1 %v585_v16 }
  0x71   : > { %576 = vmatmul.mubr.f32.vlgmr.msra.gmra.mrb[0].mxu0 %v201_v7  ;;  %579 = vmatmul.mubr.f32.vlgmr.msra.gmra.mrb[0].mxu1 %v203_v12 }
  0xed   : > { %v294_v19 = vpop.xlane.xlu0 %293 }
  0xee   : > { %311 = vst.msk [vmem:[#allocation2] sm:$0xff] %vm310_vm0, %v294_v19  ;;  %v298_v20 = vpop.xlane.xlu1 %297 }
  0xef   : > { %313 = vst.msk [vmem:[#allocation2 + $0x10] sm:$0xff] %vm310_vm0, %v298_v20 }
  0xf1   : > { %v296_v21 = vpop.xlane.xlu0 %295 }
  0xf2   : > { %312 = vst.msk [vmem:[#allocation2 + $0x8] sm:$0xff] %vm310_vm0, %v296_v21  ;;  %v300_v22 = vpop.xlane.xlu1 %299 }
  0xf3   : > { %314 = vst.msk [vmem:[#allocation2 + $0x18] sm:$0xff] %vm310_vm0, %v300_v22 }
  0xf5   : > { %v348_v23 = vld [vmem:[#allocation2] sm:$0xff] }
  0xf6   : > { %386 = vperm.xlu0 %672, %v348_v23   ;;  %v350_v25 = vld [vmem:[#allocation2 + $0x10] sm:$0xff] }
  0xf9   : > { %v349_v24 = vld [vmem:[#allocation2 + $0x8] sm:$0xff] }
  0xfa   : > { %391 = vperm.xlu1 %673, %v349_v24   ;;  %v351_v26 = vld [vmem:[#allocation2 + $0x18] sm:$0xff] }
  0xfe   : > { %396 = vperm.xlu1 %673, %v350_v25  }
 0x102   : > { %401 = vperm.xlu1 %673, %v351_v26  }
 0x12b   : > { %352 = vxpose.xlu1.b32.start [1/4] (short) (narrow) %v348_v23, 8 }
 0x12f   : > { %353 = vxpose.xlu1.b32.cont [2/4] (short) (narrow) %v349_v24, 8 }
 0x133   : > { %354 = vxpose.xlu1.b32.cont [3/4] (short) (narrow) %v350_v25, 8 }
 0x137   : > { %355 = vxpose.xlu1.b32.end [4/4] (short) (narrow) %v351_v26, 8 }
 0x144   : > { %v577_v27 = vpop.f32.mrb[0].mxu0  ;;  %v580_v28 = vpop.f32.mrb[0].mxu1 }
 0x145   : > { %307 = vst.msk [vmem:[%s1025_s17 + $0x8] sm:$0xff] %vm305_vm1, %v577_v27  ;;  %v270_v29 = vpop.f32.mrb[1].mxu0  ;;  %309 = vst.msk [vmem:[%s1025_s17 + $0x18] sm:$0xff] %vm305_vm1, %v580_v28  ;;  %v280_v30 = vpop.f32.mrb[1].mxu1 }
 0x146   : > { %306 = vst.msk [vmem:[%s1025_s17] sm:$0xff] %vm305_vm1, %v270_v29  ;;  %308 = vst.msk [vmem:[%s1025_s17 + $0x10] sm:$0xff] %vm305_vm1, %v280_v30 }
 0x14c   : > { %v417_v49 = vld [vmem:[%s1025_s17 + $0x8] sm:$0xff]  ;;  %v419_v53 = vld [vmem:[%s1025_s17 + $0x18] sm:$0xff] }
 0x14d   : > { %v416_v48 = vld [vmem:[%s1025_s17] sm:$0xff]  ;;  %v418_v51 = vld [vmem:[%s1025_s17 + $0x10] sm:$0xff] }
 0x175   : > { %v387_v39 = vpop.permute.xlu0 %386 }
 0x179   : > { %v392_v31 = vpop.permute.xlu1 %391 }
 0x17d   : > { %v397_v33 = vpop.permute.xlu1 %396 }
 0x181   : > { %v402_v35 = vpop.permute.xlu1 %401 }
 0x1ab   : > { %v368_v37 = vpop.trf.xlu1 }
 0x1ac   : > { %v407_v38 = vrot.slane %v368_v37, %v406_v36 }
 0x1ae   : > { %v408_v40 = vmul.f32 %v407_v38, %v387_v39  ;;  %v409_v41 = vmul.f32 %v407_v38, %v392_v31  ;;  %v410_v42 = vmul.f32 %v407_v38, %v397_v33  ;;  %v411_v43 = vmul.f32 %v407_v38, %v402_v35 }
 0x1b0   : > { %v412_v44 = vmax.f32 %v408_v40, 1e-16  ;;  %v413_v45 = vmax.f32 %v409_v41, 1e-16  ;;  %v414_v46 = vmax.f32 %v410_v42, 1e-16 }
 0x1b1   : > { %v415_v47 = vmax.f32 %v411_v43, 1e-16 }
 0x1b2   : > { %674 = vrsqrt.f32 %v412_v44 }
 0x1b3   : > { %676 = vrsqrt.f32 %v413_v45 }
 0x1b4   : > { %678 = vrsqrt.f32 %v414_v46 }
 0x1b5   : > { %680 = vrsqrt.f32 %v415_v47 }
 0x1bc   : > { %v675_v50 = vpop.eup %674 }
 0x1bd   : > { %v677_v52 = vpop.eup %676  ;;  %v424_v54 = vmul.f32 %v675_v50, %v416_v48 }
 0x1be   : > { %v679_v55 = vpop.eup %678  ;;  %v425_v56 = vmul.f32 %v677_v52, %v417_v49 }
 0x1bf   : > { %v681_v57 = vpop.eup %680  ;;  %429 = vst.msk [vmem:[%s1025_s17] sm:$0xff] %vm305_vm1, %v424_v54  ;;  %v426_v58 = vmul.f32 %v679_v55, %v418_v51 }
 0x1c0   : > { %430 = vst.msk [vmem:[%s1025_s17 + $0x8] sm:$0xff] %vm305_vm1, %v425_v56  ;;  %v427_v59 = vmul.f32 %v681_v57, %v419_v53 }
 0x1c1   : > { %431 = vst.msk [vmem:[%s1025_s17 + $0x10] sm:$0xff] %vm305_vm1, %v426_v58 }
 0x1c2   : > { %432 = vst.msk [vmem:[%s1025_s17 + $0x18] sm:$0xff] %vm305_vm1, %v427_v59 }
 0x1c3   : > { %753 = shalt.err (!%p750_p5)
}
 0x1c4   : > { %s754_s23 = scalar_lea.hbm %s1046_s4, 512  ;;  %s758_s26 = scalar_lea.hbm %s1105_s2, 1024 }
 0x1c5   : > { %p755_p9 = scmp.ne.s32.totalorder %s1046_s4, %s754_s23  ;;  %p759_p3 = scmp.lt.u32.totalorder %s1046_s4, %s1105_s2 }
 0x1c6   : > { %p760_p7 = scmp.lt.u32.totalorder %s758_s26, %s754_s23  ;;  %p762_p4 = scmp.lt.u32.totalorder %s754_s23, %s1046_s4 }
 0x1c7   : > { %p756_p1 = pnand %p755_p9, %p950_p10 }
 0x1c8   : > { %p761_p13 = por %p760_p7, %p759_p3 }
 0x1c9   : > { %p757_p2 = pneg %p756_p1 }
 0x1ca   : > { %p763_p6 = por %p762_p4, %p761_p13 }
 0x1cc   : > { %p764_p8 = pnand %p763_p6, %p757_p2 }
 0x1ce   : > { %767 = shalt.err (!%p764_p8)
}
 0x1cf   : > { %s834_s8 = smov 128   ;;  %s835_s17 = smov 8  }
 0x1d0   : > { %599 = dma.vmem_to_hbm [thread:$0]  (%p950_p10), %s1048_s21, 512, %s1046_s4, %s434_s12, %s834_s8, %s834_s8, %s835_s17  }
 0x1d1 PF: > { %s462_s19 = sand.u32 1, %s806_s9   ;;  %p1123_p12 = scmp.ne.s32.totalorder %s1113_s20, 0 }
 0x1d2   : > { %p1124_p11 = scmp.ge.s32.totalorder %s826_s14, 2  ;;  %s463_s6 = scalar_lea.sflag [#allocation5], %s462_s19 }
 0x1d4   : > { %p610_p0 = pnand %p1124_p11, %p1123_p12 }
 0x1d6   : > { %801 = dma.done.wait (!%p610_p0), %s463_s6, 512  }
 0x1d7   : > { %803 = vsyncadd (!%p610_p0), %s463_s6, 4294966784  ;;  %s19_s14 = sadd.s32 1, %s826_s14   ;;  %s1125_s9 = smov %s810_s10 }
 0x1d8   : > { %p16_p5 = scmp.ge.s32.totalorder %s19_s14, 4   ;;  %s1126_s10 = smov %s814_s11 }
 0x1d9   : > { %s1127_s11 = smov %s959_s28  ;;  %s1128_s12 = smov %s822_s13 }
 0x1da   : > { %s1129_s13 = smov %s1131_s25  ;;  %18 = sbr.rel (!%p16_p5) target bundleno = 7 (0x7), region = 89 }
 0x1e1   :  { %468 = vsyncpa [#allocation4], 1 }
 0x1e2   :  { %470 = vsyncpa [#allocation4 + $0x1], 1 }
 0x1e3   :  { %471 = vsyncpa [#allocation7], 1 }
 0x1e4   :  { %472 = vsyncpa [#allocation5], 1 }
 0x1e5   :  { %474 = vsyncpa [#allocation5 + $0x1], 1 }

</bundles_post_ra>
